<compile_context>
chip_gen: v7x
topology: tpu7x:2x2x1
jax: 0.10.0
libtpu: 0.0.40
codegen_flags: <defaults>
</compile_context>

<pallas_src>
import functools

import jax
import jax.numpy as jnp
from jax import lax
from jax.experimental import pallas as pl
from jax.experimental.pallas import tpu as pltpu


def _round_up(x, m):
    return ((x + m - 1) // m) * m


# --------------------------------------------------------------------------- kernel
def actor_critic_kernel(states_ref, w1_ref, b1_ref, w2t_ref, b2t_ref, out_ref):
    # states_ref : (TB, S)
    # w1_ref     : (S, HPAD)        fused  [wa1 | wc1 | 0-pad]
    # b1_ref     : (1, HPAD)        fused  [ba1 | bc1 | 0-pad]
    # w2t_ref    : (OUT_SUB, HPAD)  transposed block-diag: mu rows read actor hidden,
    #                               V row reads critic hidden, pad rows are zero.
    # b2t_ref    : (OUT_SUB, 1)     [ba2 ... | bc2 | 0-pad]^T
    # out_ref    : (OUT_SUB, TB)    batch on the lane axis: rows = [mu_0..mu_{A-1}, V, 0..]
    x = states_ref[...]

    # Fused layer 1 (actor + critic hidden in one MXU pass), f32 accumulation, bias + ReLU.
    h = jnp.dot(x, w1_ref[...], preferred_element_type=jnp.float32) + b1_ref[...]
    h = jnp.maximum(h, 0.0)

    # Fused layer 2 as an NT matmul: (OUT_SUB, HPAD) x (TB, HPAD)^T -> (OUT_SUB, TB).
    out_t = lax.dot_general(
        w2t_ref[...], h.astype(w2t_ref.dtype),
        dimension_numbers=(((1,), (1,)), ((), ())),
        preferred_element_type=jnp.float32,
    ) + b2t_ref[...]
    out_ref[...] = out_t.astype(out_ref.dtype)


# --------------------------------------------------------------------------- params
def fuse_params(params, mxu_dtype=jnp.float32):
    """One-time weight fusion: concat layer-1, transposed block-diag layer-2, 128-lane pad."""
    wa1, wc1 = params["wa1"], params["wc1"]          # (S, H), (S, H)
    ba1, bc1 = params["ba1"], params["bc1"]          # (1, H), (1, H)
    wa2, wc2 = params["wa2"], params["wc2"]          # (H, A), (H, 1)
    ba2, bc2 = params["ba2"], params["bc2"]          # (1, A), (1, 1)

    S, H = wa1.shape
    A = wa2.shape[1]
    h_pad = _round_up(2 * H, 128)                    # lane-dense fused hidden width
    out_sub = _round_up(A + 1, 8)                    # packed output rows (sublane multiple)

    w1 = jnp.zeros((S, h_pad), jnp.float32)
    w1 = w1.at[:, :H].set(wa1).at[:, H:2 * H].set(wc1)
    b1 = jnp.zeros((1, h_pad), jnp.float32)
    b1 = b1.at[:, :H].set(ba1).at[:, H:2 * H].set(bc1)

    # Transposed block-diagonal layer 2: zero padding keeps mu and V strictly independent.
    w2t = jnp.zeros((out_sub, h_pad), jnp.float32)
    w2t = w2t.at[:A, :H].set(wa2.T)                  # mu rows <- actor hidden
    w2t = w2t.at[A, H:2 * H].set(wc2[:, 0])          # V row   <- critic hidden
    b2t = jnp.zeros((out_sub, 1), jnp.float32)
    b2t = b2t.at[:A, 0].set(ba2[0])
    b2t = b2t.at[A, 0].set(bc2[0, 0])

    return dict(
        w1=w1.astype(mxu_dtype),
        b1=b1,                                        # bias / ReLU stay f32 on all gens
        w2t=w2t.astype(mxu_dtype),
        b2t=b2t,
        ln_sigma=params["ln_sigma"].astype(jnp.float32),   # (1, A)
    )


def _choose_batch_tile(B, block_b):
    """Batch tile: full batch when small; else a multiple of 128 with >= 2 grid steps."""
    if B <= 2 * 128:
        return B                                      # single tile (full-dim exemption)
    tb = min(block_b, _round_up(-(-B // 2), 128))     # >= 2 steps -> v7x uses both TCs
    return max(128, (tb // 128) * 128)


# --------------------------------------------------------------------------- wrapper
@functools.partial(jax.jit, static_argnames=("block_b",))
def actor_critic_forward(states, fused, block_b=1024):
    """Returns (mu, sigma, V) — the Normal(mu, sigma) parameters and the value."""
    B, S = states.shape
    A = fused["ln_sigma"].shape[-1]
    h_pad = fused["w1"].shape[1]
    out_sub = fused["w2t"].shape[0]
    mxu_dtype = fused["w1"].dtype

    tb = _choose_batch_tile(B, block_b)
    grid = (pl.cdiv(B, tb),)                          # ragged last block handled by Pallas

    x = states.astype(mxu_dtype)

    flops = 2 * B * (S * h_pad + h_pad * out_sub)
    bytes_accessed = (
        x.size * x.dtype.itemsize
        + fused["w1"].size * fused["w1"].dtype.itemsize
        + fused["b1"].size * 4
        + fused["w2t"].size * fused["w2t"].dtype.itemsize
        + fused["b2t"].size * 4
        + out_sub * B * 4
    )

    packed_t = pl.pallas_call(
        actor_critic_kernel,
        out_shape=jax.ShapeDtypeStruct((out_sub, B), jnp.float32),
        grid=grid,
        in_specs=[
            pl.BlockSpec((tb, S), lambda i: (i, 0)),                 # states tile
            pl.BlockSpec(fused["w1"].shape, lambda i: (0, 0)),       # VMEM-resident weights
            pl.BlockSpec(fused["b1"].shape, lambda i: (0, 0)),
            pl.BlockSpec(fused["w2t"].shape, lambda i: (0, 0)),
            pl.BlockSpec(fused["b2t"].shape, lambda i: (0, 0)),
        ],
        out_specs=pl.BlockSpec((out_sub, tb), lambda i: (0, i)),     # batch on lanes, lane-dense
        compiler_params=pltpu.CompilerParams(
            dimension_semantics=("parallel",),                       # batch axis -> megacore
        ),
        cost_estimate=pl.CostEstimate(
            flops=flops, transcendentals=0, bytes_accessed=bytes_accessed),
    )(x, fused["w1"], fused["b1"], fused["w2t"], fused["b2t"])

    mu = packed_t[:A, :].T                            # (B, A)
    v = packed_t[A:A + 1, :].T                        # (B, 1)
    # sigma is state-independent: computed once here, broadcast lazily (no kernel store).
    sigma = jnp.broadcast_to(jnp.exp(fused["ln_sigma"]), (B, A))
    return mu, sigma, v


# --------------------------------------------------------------------------- init / reference
def init_params(key, state_dim, action_dim, hidden_dim, sigma=0.0):
    """Deterministic synthetic init (shapes match the torch module's __init__)."""
    ks = jax.random.split(key, 8)

    def lin(kw, kb, fan_in, fan_out):
        bound = 1.0 / jnp.sqrt(fan_in)
        w = jax.random.uniform(kw, (fan_in, fan_out), jnp.float32, -bound, bound)
        b = jax.random.uniform(kb, (1, fan_out), jnp.float32, -bound, bound)
        return w, b

    wa1, ba1 = lin(ks[0], ks[1], state_dim, hidden_dim)
    wa2, ba2 = lin(ks[2], ks[3], hidden_dim, action_dim)
    wc1, bc1 = lin(ks[4], ks[5], state_dim, hidden_dim)
    wc2, bc2 = lin(ks[6], ks[7], hidden_dim, 1)
    ln_sigma = jnp.ones((1, action_dim), jnp.float32) * sigma

    return dict(wa1=wa1, ba1=ba1, wa2=wa2, ba2=ba2,
                wc1=wc1, bc1=bc1, wc2=wc2, bc2=bc2, ln_sigma=ln_sigma)


def reference_forward(states, p):
    h_a = jnp.maximum(states @ p["wa1"] + p["ba1"], 0.0)
    mu = h_a @ p["wa2"] + p["ba2"]
    h_c = jnp.maximum(states @ p["wc1"] + p["bc1"], 0.0)
    v = h_c @ p["wc2"] + p["bc2"]
    sigma = jnp.broadcast_to(jnp.exp(p["ln_sigma"]), mu.shape)
    return mu, sigma, v


if __name__ == "__main__":
    STATE_DIM, ACTION_DIM, HIDDEN_DIM = 16, 4, 32

    key = jax.random.PRNGKey(0)
    k_params, k_s1, k_s2 = jax.random.split(key, 3)
    params = init_params(k_params, STATE_DIM, ACTION_DIM, HIDDEN_DIM, sigma=0.0)

    # One-time param fusion (f32 MXU operands so the check is exact; use jnp.bfloat16 on
    # v6e/v7x for the fast MXU path and loosen the tolerance to ~1e-2).
    fused = fuse_params(params, mxu_dtype=jnp.float32)

    # Small single-tile batch.
    states = jax.random.normal(k_s1, (8, STATE_DIM), jnp.float32)
    mu, sigma, v = actor_critic_forward(states, fused)
    jax.block_until_ready((mu, sigma, v))
    mu_ref, sigma_ref, v_ref = reference_forward(states, params)
    assert jnp.allclose(mu, mu_ref, atol=1e-5), "mu mismatch (small batch)"
    assert jnp.allclose(sigma, sigma_ref, atol=1e-5), "sigma mismatch (small batch)"
    assert jnp.allclose(v, v_ref, atol=1e-5), "V mismatch (small batch)"

    # Multi-tile batch exercising the cdiv grid with a ragged last block (no batch padding).
    states2 = jax.random.normal(k_s2, (300, STATE_DIM), jnp.float32)
    mu2, sigma2, v2 = actor_critic_forward(states2, fused)
    jax.block_until_ready((mu2, sigma2, v2))
    mu2_ref, sigma2_ref, v2_ref = reference_forward(states2, params)
    assert jnp.allclose(mu2, mu2_ref, atol=1e-5), "mu mismatch (multi-tile)"
    assert jnp.allclose(sigma2, sigma2_ref, atol=1e-5), "sigma mismatch (multi-tile)"
    assert jnp.allclose(v2, v2_ref, atol=1e-5), "V mismatch (multi-tile)"

    print("KERNEL_OK")
</pallas_src>

<mosaic_0001>
module attributes {stable_mosaic.version = 11 : i64} {
  func.func @actor_critic_kernel(%arg0: i32, %arg1: memref<8x16xf32, #tpu.memory_space<vmem>>, %arg2: memref<16x128xf32, #tpu.memory_space<vmem>>, %arg3: memref<1x128xf32, #tpu.memory_space<vmem>>, %arg4: memref<8x128xf32, #tpu.memory_space<vmem>>, %arg5: memref<8x1xf32, #tpu.memory_space<vmem>>, %arg6: memref<8x8xf32, #tpu.memory_space<vmem>>) attributes {dimension_semantics = [#tpu.dimension_semantics<parallel>], iteration_bounds = array<i64: 1>, scalar_prefetch = 0 : i64, scratch_operands = 0 : i64, tpu.core_type = #tpu.core_type<tc>, window_params = [{transform_indices = @transform_0, window_bounds = array<i64: 8, 16>}, {pipeline_mode = #tpu.pipeline_mode<synchronous>, transform_indices = @transform_1, window_bounds = array<i64: 16, 128>}, {pipeline_mode = #tpu.pipeline_mode<synchronous>, transform_indices = @transform_2, window_bounds = array<i64: 1, 128>}, {pipeline_mode = #tpu.pipeline_mode<synchronous>, transform_indices = @transform_3, window_bounds = array<i64: 8, 128>}, {pipeline_mode = #tpu.pipeline_mode<synchronous>, transform_indices = @transform_4, window_bounds = array<i64: 8, 1>}, {transform_indices = @transform_5, window_bounds = array<i64: 8, 8>}]} {
    %c0 = arith.constant 0 : index
    %c0_0 = arith.constant 0 : index
    %0 = vector.load %arg1[%c0, %c0_0] : memref<8x16xf32, #tpu.memory_space<vmem>>, vector<8x16xf32>
    %c0_1 = arith.constant 0 : index
    %c0_2 = arith.constant 0 : index
    %1 = vector.load %arg2[%c0_1, %c0_2] : memref<16x128xf32, #tpu.memory_space<vmem>>, vector<16x128xf32>
    %cst = arith.constant dense<0.000000e+00> : vector<8x128xf32>
    %2 = tpu.matmul %0, %1, %cst {dimension_numbers = #tpu.dot_dimension_numbers<[1], [0], [0], [1], [0, 0, 1, 1], [], []>} : vector<8x16xf32>, vector<16x128xf32>, vector<8x128xf32> -> vector<8x128xf32>
    %c0_3 = arith.constant 0 : index
    %c0_4 = arith.constant 0 : index
    %3 = vector.load %arg3[%c0_3, %c0_4] : memref<1x128xf32, #tpu.memory_space<vmem>>, vector<1x128xf32>
    %4 = vector.broadcast %3 : vector<1x128xf32> to vector<8x128xf32>
    %5 = arith.addf %2, %4 : vector<8x128xf32>
    %cst_5 = arith.constant 0.000000e+00 : f32
    %6 = vector.broadcast %cst_5 : f32 to vector<8x128xf32>
    %7 = arith.maximumf %5, %6 : vector<8x128xf32>
    %c0_6 = arith.constant 0 : index
    %c0_7 = arith.constant 0 : index
    %8 = vector.load %arg4[%c0_6, %c0_7] : memref<8x128xf32, #tpu.memory_space<vmem>>, vector<8x128xf32>
    %cst_8 = arith.constant dense<0.000000e+00> : vector<8x8xf32>
    %9 = tpu.matmul %8, %7, %cst_8 {dimension_numbers = #tpu.dot_dimension_numbers<[1], [1], [0], [0], [0, 0, 1, 0], [], []>} : vector<8x128xf32>, vector<8x128xf32>, vector<8x8xf32> -> vector<8x8xf32>
    %c0_9 = arith.constant 0 : index
    %c0_10 = arith.constant 0 : index
    %10 = vector.load %arg5[%c0_9, %c0_10] : memref<8x1xf32, #tpu.memory_space<vmem>>, vector<8x1xf32>
    %11 = vector.broadcast %10 : vector<8x1xf32> to vector<8x8xf32>
    %12 = arith.addf %9, %11 : vector<8x8xf32>
    %c0_11 = arith.constant 0 : index
    %c0_12 = arith.constant 0 : index
    %13 = vector.load %arg6[%c0_11, %c0_12] : memref<8x8xf32, #tpu.memory_space<vmem>>, vector<8x8xf32>
    tpu.vector_store %arg6[%c0_11, %c0_12], %12 {strides = array<i32>} : memref<8x8xf32, #tpu.memory_space<vmem>>, vector<8x8xf32>,
    return
  }
  func.func @transform_0(%arg0: i32) -> (i32, i32) {
    %c0_i32 = arith.constant 0 : i32
    %c0_i32_0 = arith.constant 0 : i32
    return %arg0, %c0_i32 : i32, i32
  }
  func.func @transform_1(%arg0: i32) -> (i32, i32) {
    %c0_i32 = arith.constant 0 : i32
    %c0_i32_0 = arith.constant 0 : i32
    %c0_i32_1 = arith.constant 0 : i32
    return %c0_i32, %c0_i32_0 : i32, i32
  }
  func.func @transform_2(%arg0: i32) -> (i32, i32) {
    %c0_i32 = arith.constant 0 : i32
    %c0_i32_0 = arith.constant 0 : i32
    %c0_i32_1 = arith.constant 0 : i32
    return %c0_i32, %c0_i32_0 : i32, i32
  }
  func.func @transform_3(%arg0: i32) -> (i32, i32) {
    %c0_i32 = arith.constant 0 : i32
    %c0_i32_0 = arith.constant 0 : i32
    %c0_i32_1 = arith.constant 0 : i32
    return %c0_i32, %c0_i32_0 : i32, i32
  }
  func.func @transform_4(%arg0: i32) -> (i32, i32) {
    %c0_i32 = arith.constant 0 : i32
    %c0_i32_0 = arith.constant 0 : i32
    %c0_i32_1 = arith.constant 0 : i32
    return %c0_i32, %c0_i32_0 : i32, i32
  }
  func.func @transform_5(%arg0: i32) -> (i32, i32) {
    %c0_i32 = arith.constant 0 : i32
    %c0_i32_0 = arith.constant 0 : i32
    return %c0_i32, %arg0 : i32, i32
  }
}

</mosaic_0001>

<bundles_post_ra>
// kernel: actor_critic_forward.1
= control target key start
LH: loop header
LB: loop body
LE: loop exit
PB: predicated region body
PF: predicated region fallthrough
CT: control target
= control target key end

     0   :  { %10 = vsyncpa [#allocation3], 0  ;;  %s366_s0 = inlined_call_operand.hbm [shape: f32[8,16], index: 0, kind: input, shape index: {}]   ;;  %s367_s1 = inlined_call_operand.vmem [shape: f32[16,128], index: 1, kind: input, shape index: {}]   ;;  %s368_s2 = inlined_call_operand.vmem [shape: f32[1,128], index: 2, kind: input, shape index: {}]   ;;  %s369_s3 = inlined_call_operand.hbm [shape: f32[8,128], index: 3, kind: input, shape index: {}]   ;;  %s370_s4 = inlined_call_operand.vmem [shape: f32[8,1], index: 4, kind: input, shape index: {}]   ;;  %s371_s5 = inlined_call_operand.vmem [shape: f32[8,8], index: 5, kind: output, shape index: {}]  }
   0x1   :  { %11 = vsyncpa [#allocation5], 0  ;;  %s291_s18 = smov [#allocation2]   ;;  %s292_s20 = smov [#allocation4]  }
   0x2   :  { %s18_s19 = sshll.u32 %s291_s18, 4  ;;  %s32_s21 = sshll.u32 %s292_s20, 4  ;;  %s19_s19 = int_to_ptr.vmem [resolvable:$true] %s18_s19  ;;  %s33_s21 = int_to_ptr.vmem [resolvable:$true] %s32_s21 }
   0x3   :  { %s243_s24 = scalar_lea.hbm %s366_s0, 128 }
   0x4   :  { %p244_p0 = scmp.ne.s32.totalorder %s366_s0, %s243_s24  ;;  %p247_p1 = scmp.lt.u32.totalorder %s243_s24, %s366_s0 }
   0x6   :  { %p249_p2 = pnand %p247_p1, %p244_p0 }
   0x8   :  { %252 = shalt.err (!%p249_p2)
}
   0x9   :  { %s253_s29 = scalar_lea.vmem %s19_s19, 128  ;;  %p258_p4 = scmp.lt.s32.totalorder %s19_s19, %s19_s19 }
   0xa   :  { %p254_p3 = scmp.ne.s32.totalorder %s19_s19, %s253_s29  ;;  %p259_p5 = scmp.lt.s32.totalorder %s253_s29, %s253_s29 }
   0xc   :  { %p260_p6 = por %p259_p5, %p258_p4 }
   0xe   :  { %p261_p7 = pnand %p260_p6, %p254_p3 }
  0x10   :  { %264 = shalt.err (!%p261_p7)
}
  0x11   :  { %21 = dma.hbm_to_vmem [thread:$0]  %s366_s0, 128, %s19_s19, [#allocation3]  }
  0x12   :  { %s265_s9 = scalar_lea.hbm %s369_s3, 128 }
  0x13   :  { %p266_p8 = scmp.ne.s32.totalorder %s369_s3, %s265_s9  ;;  %p269_p9 = scmp.lt.u32.totalorder %s265_s9, %s369_s3 }
  0x15   :  { %p271_p10 = pnand %p269_p9, %p266_p8 }
  0x17   :  { %274 = shalt.err (!%p271_p10)
}
  0x18   :  { %s275_s14 = scalar_lea.vmem %s33_s21, 128  ;;  %p280_p12 = scmp.lt.s32.totalorder %s33_s21, %s33_s21 }
  0x19   :  { %p276_p11 = scmp.ne.s32.totalorder %s33_s21, %s275_s14  ;;  %p281_p13 = scmp.lt.s32.totalorder %s275_s14, %s275_s14 }
  0x1b   :  { %p282_p0 = por %p281_p13, %p280_p12 }
  0x1d   :  { %p283_p1 = pnand %p282_p0, %p276_p11 }
  0x1f   :  { %286 = shalt.err (!%p283_p1)
}
  0x20   :  { %35 = dma.hbm_to_vmem [thread:$0]  %s369_s3, 128, %s33_s21, [#allocation5]  }
  0x21   :  { %287 = dma.done.wait [#allocation3], 128  }
  0x22   :  { %288 = vsyncadd [#allocation3], 4294967168 }
  0x23   :  { %289 = dma.done.wait [#allocation5], 128  }
  0x24   :  { %290 = vsyncadd [#allocation5], 4294967168  ;;  %v293_v0 = vmov 0.0|0.0   ;;  %vm294_vm0 = vmmov 0   ;;  %v295_v1 = vmov 0.0   ;;  %v45_v2 = vld [vmem:[%s367_s1] sm:$0xff] }
  0x25   :  { %233 = vmatprep.subr.bf16.mxu0 %v293_v0  ;;  %225 = vmatprep.mubr.msk.f32.mxu0 %vm294_vm0, %v295_v1  ;;  %v46_v3 = vld [vmem:[%s367_s1 + $0x8] sm:$0xff]  ;;  %v44_v5 = vld [vmem:[#allocation2] sm:$0xff]  ;;  %vm54_vm1 = vcmask 130048   ;;  %v296_v7 = vmov 0   ;;  %vm206_vm2 = vcmask 64512  }
  0x26   :  { %228 = vmatprep.subr.mxu1 %v295_v1  ;;  %230 = vmatprep.mubr.msk.f32.mxu1 %vm294_vm0, %v295_v1  ;;  %v234_v4 = vpack.c.bf16 %v46_v3, %v45_v2  ;;  %v130_v6 = vld [vmem:[%s370_s4] sm:$0xff]  ;;  %v129_v13 = vld [vmem:[#allocation4] sm:$0xff] }
  0x27   :  { %242 = vset.pattern.permute.xlu0 %v296_v7  ;;  %v214_v8 = vld [vmem:[%s368_s2] ss:$0 sm:$0xff] }
  0x28   :  { %235 = vmatpush3.bf16.msra.mxu0 %v234_v4  ;;  %133 = vperm.xlu0 %242, %v130_v6  }
  0x2b   :  { %226 = vmatmul.mubr.msk.f32.vlgmr.msra.gmra.mrb[0].mxu0 %vm54_vm1, %v44_v5 }
  0xa7   :  { %v134_v14 = vpop.permute.xlu0 %133 }
  0xfe   :  { %v124_v9 = vpop.f32.mrb[0].mxu0 }
  0xff   :  { %v125_v10 = vadd.f32 %v214_v8, %v124_v9  ;;  %v227_v11 = vpop.f32.mrb[1].mxu0 }
 0x101   :  { %v128_v12 = vmax.f32 %v125_v10, 0.0 }
 0x103   :  { %229 = vmatpush3.xpose.msra.mxu1 %v128_v12 }
 0x106   :  { %231 = vmatmul.mubr.f32.vlgmr.msra.gmra.mrb[0].mxu1 %v129_v13 }
 0x1d9   :  { %v202_v15 = vpop.f32.mrb[0].mxu1 }
 0x1da   :  { %v203_v16 = vadd.f32 %v202_v15, %v134_v14  ;;  %v232_v17 = vpop.f32.mrb[1].mxu1 }
 0x1dc   :  { %207 = vst.msk [vmem:[%s371_s5] sm:$0xff] %vm206_vm2, %v203_v16 }
 0x1dd   :  { %212 = vsyncpa [#allocation3], 1 }
 0x1de   :  { %213 = vsyncpa [#allocation5], 1 }

</bundles_post_ra>
